<compile_context>
chip_gen: v5e
topology: v5e:2x2
jax: 0.10.0
libtpu: 0.0.40
codegen_flags: <defaults>
</compile_context>

<pallas_src>
import jax
import jax.numpy as jnp
from jax.experimental import pallas as pl
from jax.experimental.pallas import tpu as pltpu


_TARGET_BLOCK_BYTES = 2 * 1024 * 1024   # ~2 MiB/block: >=2 blocks for >=4 MiB tensors
_VMEM_LIMIT_BYTES = 32 * 1024 * 1024    # safe on v5e/v6e (128 MiB) and v7x (64 MiB)
_FALLBACK_COLS = 1024                   # only used on the (rare) pad path


def _round_up(x: int, m: int) -> int:
    return ((x + m - 1) // m) * m


def _relu_kernel(x_ref, o_ref):
    # Pure elementwise ReLU on the whole VMEM tile (VPU op; kernel is DMA-bound).
    o_ref[...] = jnp.maximum(x_ref[...], jnp.zeros((), x_ref.dtype))


@jax.jit
def my_relu2(x: jax.Array) -> jax.Array:
    """Pallas ReLU matching MyRelu2.forward's numeric output. NCHW in/out."""
    orig_shape = x.shape
    dtype = x.dtype
    total = x.size
    itemsize = jnp.dtype(dtype).itemsize
    # Native packed sublane multiple: f32 -> 8 rows, bf16 -> 16, int8/fp8 -> 32.
    sub_mult = max(8, 32 // max(1, itemsize))

    # Widest lane-dense column count that divides `total` -> zero-copy reshape.
    cols = None
    for c in (1024, 512, 256, 128):
        if total % c == 0:
            cols = c
            break
    needs_pad = cols is None
    if needs_pad:
        cols = _FALLBACK_COLS

    rows = pl.cdiv(total, cols)
    padded_total = rows * cols

    xf = x.reshape(-1)
    if needs_pad:
        # Rare path (total not a multiple of 128): pad to a whole row only.
        # Zero padding is benign under ReLU and is sliced off at the end.
        xf = jnp.pad(xf, (0, padded_total - total))
    x2 = xf.reshape(rows, cols)

    # Tile rows: sublane-aligned, ~2 MiB/block, and at least 2 blocks whenever
    # the tensor is big enough to split (keeps both v7x TensorCores busy).
    if rows <= sub_mult:
        tile_rows = rows                    # whole array as one block (always legal)
    else:
        target_rows = max(sub_mult, _TARGET_BLOCK_BYTES // (cols * itemsize))
        half_rows = _round_up(pl.cdiv(rows, 2), sub_mult)
        tile_rows = min(target_rows, half_rows)
    num_blocks = pl.cdiv(rows, tile_rows)   # partial edge block is masked by Pallas

    # Only alias input->output when the kernel input is a fresh intermediate
    # (the padded copy).  On the zero-copy path the input is a bitcast of the
    # un-donated jit parameter and aliasing would force a defensive HBM copy.
    aliases = {0: 0} if needs_pad else {}

    out2 = pl.pallas_call(
        _relu_kernel,
        out_shape=jax.ShapeDtypeStruct((rows, cols), dtype),
        grid=(num_blocks,),
        in_specs=[pl.BlockSpec((tile_rows, cols), lambda i: (i, 0))],
        out_specs=pl.BlockSpec((tile_rows, cols), lambda i: (i, 0)),
        input_output_aliases=aliases,
        cost_estimate=pl.CostEstimate(
            flops=total,
            transcendentals=0,
            bytes_accessed=2 * total * itemsize,
        ),
        compiler_params=pltpu.CompilerParams(
            dimension_semantics=("parallel",),
            vmem_limit_bytes=_VMEM_LIMIT_BYTES,
        ),
    )(x2)

    out = out2.reshape(-1)
    if needs_pad:
        out = out[:total]
    return out.reshape(orig_shape)


# TODO(synk): save_act() pickles activations to disk (side-effecting file I/O);
# no Pallas/TPU equivalent, intentionally not implemented.


if __name__ == "__main__":
    key = jax.random.PRNGKey(0)
    # NCHW, small shapes consistent with a conv-net activation.
    x = jax.random.normal(key, (2, 4, 16, 16), dtype=jnp.float32)

    # Reference computed up front with plain JAX.
    ref = jnp.maximum(x, 0.0)
    ref = jax.block_until_ready(ref)

    y = my_relu2(x)
    y = jax.block_until_ready(y)

    assert y.shape == x.shape and y.dtype == x.dtype
    assert bool(jnp.allclose(y, ref)), "Pallas ReLU mismatch vs reference"

    print("KERNEL_OK")
</pallas_src>

<mosaic_0001>
module attributes {stable_mosaic.version = 11 : i64} {
  func.func @_relu_kernel(%arg0: i32, %arg1: memref<2x1024xf32, #tpu.memory_space<vmem>>, %arg2: memref<2x1024xf32, #tpu.memory_space<vmem>>) attributes {dimension_semantics = [#tpu.dimension_semantics<parallel>], iteration_bounds = array<i64: 1>, scalar_prefetch = 0 : i64, scratch_operands = 0 : i64, tpu.core_type = #tpu.core_type<tc>, window_params = [{transform_indices = @transform_0, window_bounds = array<i64: 2, 1024>}, {transform_indices = @transform_1, window_bounds = array<i64: 2, 1024>}]} {
    %c0 = arith.constant 0 : index
    %c0_0 = arith.constant 0 : index
    %0 = vector.load %arg1[%c0, %c0_0] : memref<2x1024xf32, #tpu.memory_space<vmem>>, vector<2x1024xf32>
    %cst = arith.constant 0.000000e+00 : f32
    %1 = vector.broadcast %cst : f32 to vector<2x1024xf32>
    %2 = arith.maximumf %0, %1 : vector<2x1024xf32>
    %c0_1 = arith.constant 0 : index
    %c0_2 = arith.constant 0 : index
    %3 = vector.load %arg2[%c0_1, %c0_2] : memref<2x1024xf32, #tpu.memory_space<vmem>>, vector<2x1024xf32>
    tpu.vector_store %arg2[%c0_1, %c0_2], %2 {strides = array<i32>} : memref<2x1024xf32, #tpu.memory_space<vmem>>, vector<2x1024xf32>,
    return
  }
  func.func @transform_0(%arg0: i32) -> (i32, i32) {
    %c0_i32 = arith.constant 0 : i32
    %c0_i32_0 = arith.constant 0 : i32
    return %arg0, %c0_i32 : i32, i32
  }
  func.func @transform_1(%arg0: i32) -> (i32, i32) {
    %c0_i32 = arith.constant 0 : i32
    %c0_i32_0 = arith.constant 0 : i32
    return %arg0, %c0_i32 : i32, i32
  }
}

</mosaic_0001>

<bundles_post_ra>
// kernel: my_relu2.1
= control target key start
LH: loop header
LB: loop body
LE: loop exit
PB: predicated region body
PF: predicated region fallthrough
CT: control target
= control target key end

     0   :  { %s40_s0 = inlined_call_operand.vmem [shape: f32[2,1024], index: 0, kind: input, shape index: {}]   ;;  %s41_s1 = inlined_call_operand.vmem [shape: f32[2,1024], index: 1, kind: output, shape index: {}]  }
   0x1   :  { %v8_v0 = vld [vmem:[%s40_s0] sm:$0xff]  ;;  %v9_v1 = vld [vmem:[%s40_s0 + $0x8] sm:$0xff] }
   0x2   :  { %v10_v2 = vmax.f32 %v8_v0, 0.0  ;;  %v11_v3 = vmax.f32 %v9_v1, 0.0 }
   0x4   :  { %12 = vst [vmem:[%s41_s1] sm:$0xff] %v10_v2 }
   0x5   :  { %13 = vst [vmem:[%s41_s1 + $0x8] sm:$0xff] %v11_v3 }

</bundles_post_ra>
